<compile_context>
chip_gen: v7x
topology: tpu7x:2x2x1
jax: 0.10.0
libtpu: 0.0.40
codegen_flags: <defaults>
</compile_context>

<pallas_src>
import functools
import math

import jax
import jax.numpy as jnp
import numpy as np
from jax import lax
from jax.experimental import pallas as pl
from jax.experimental.pallas import tpu as pltpu

_LANE = 128
# lowbias32-style hash constants (as signed int32).
_M1 = 0x7FEB352D            # 2145989933
_M2 = -2073254261           # 0x846CA68B as int32
_GOLDEN = -1640531527       # 0x9E3779B9 as int32


def _uniform31(shape, seed, base_index):
    """Stateless 31-bit uniform integers per element (portable hash PRNG).

    Hash of (seed, global flat element index); works identically under Mosaic
    and interpret mode.  # TODO(synk): cannot bit-match torch.nn.Dropout's RNG.
    """
    s_i = lax.broadcasted_iota(jnp.int32, shape, 0)
    b_i = lax.broadcasted_iota(jnp.int32, shape, 1)
    e_i = lax.broadcasted_iota(jnp.int32, shape, 2)
    _, bsz, emb = shape
    idx = base_index + (s_i * bsz + b_i) * emb + e_i          # global element id
    h = idx ^ (seed * _GOLDEN)
    h = h ^ lax.shift_right_logical(h, 16)
    h = h * _M1
    h = h ^ lax.shift_right_logical(h, 15)
    h = h * _M2
    h = h ^ lax.shift_right_logical(h, 16)
    return h & 0x7FFFFFFF


def _pos_enc_kernel(*refs, keep_prob, apply_dropout):
    if apply_dropout:
        seed_ref, x_ref, enc_ref, o_ref = refs
    else:
        x_ref, enc_ref, o_ref = refs

    # enc tile is (ts, E); broadcast over the batch (sublane) axis in-register.
    y = x_ref[...] + enc_ref[...][:, None, :]

    if apply_dropout:
        ts, bsz, emb = y.shape
        base = pl.program_id(0) * (ts * bsz * emb)            # block-global offset
        bits = _uniform31(y.shape, seed_ref[0], base)
        threshold = jnp.int32(min(int(round(keep_prob * 2.0 ** 31)), 2 ** 31 - 1))
        keep = (bits < threshold).astype(jnp.float32)
        # Single fused f32 multiply: mask and 1/keep_prob rescale together
        # (avoids a select and avoids rounding 1/keep_prob to bf16).
        y = y.astype(jnp.float32) * (keep * jnp.float32(1.0 / keep_prob))

    o_ref[...] = y.astype(o_ref.dtype)


def make_sinusoidal_encoding(block_size: int, embedding_dimension: int,
                             dtype=jnp.float32) -> jnp.ndarray:
    """Sinusoidal table matching the torch buffer, stored 2-D (block_size, E).

    (The torch module keeps (block_size, 1, E) purely for broadcasting; storing
    it squeezed keeps the VMEM tiles sublane-dense.)  Build it once, in the
    model dtype, and reuse it across forward calls.
    """
    assert embedding_dimension % 2 == 0, "Embedding dimension must be an even number"
    position = jnp.arange(block_size, dtype=jnp.float32)[:, None]
    denominator = jnp.exp(
        jnp.arange(0, embedding_dimension, 2, dtype=jnp.float32)
        * (-math.log(10000.0) / embedding_dimension))
    enc = jnp.zeros((block_size, embedding_dimension), jnp.float32)
    enc = enc.at[:, 0::2].set(jnp.sin(position * denominator))
    enc = enc.at[:, 1::2].set(jnp.cos(position * denominator))
    return enc.astype(dtype)


def _vmem_capacity_bytes() -> int:
    try:
        return int(pltpu.get_tpu_info().vmem_capacity_bytes)
    except Exception:
        return 64 * 1024 * 1024   # conservative fallback: v7x per-TensorCore VMEM


def positional_encoding(
    x: jnp.ndarray,
    encoding: jnp.ndarray,
    *,
    dropout: float = 0.0,
    training: bool = False,
    seed: int = 0,
) -> jnp.ndarray:
    """x + encoding[:S] followed by optional inverted dropout (seq-first layout)."""
    S, B, E = x.shape
    if encoding.ndim == 3:                       # accept the torch-shaped buffer too
        encoding = encoding.reshape(encoding.shape[0], encoding.shape[-1])
    block_size, enc_e = encoding.shape
    assert enc_e == E, "Encoding embedding dimension must match x."
    assert block_size >= S, "Sequence length must not exceed block size."

    # Slice to S rows (tiny) so the enc BlockSpec block can equal the full array
    # when ts == S.  Pre-cast the table once outside this wrapper in production.
    enc = encoding[:S]
    if enc.dtype != x.dtype:
        enc = enc.astype(x.dtype)

    itemsize = jnp.dtype(x.dtype).itemsize
    sublanes = 8 * max(1, 4 // itemsize)               # 8 (f32) / 16 (bf16) / 32 (i8)
    padded_B = -(-B // sublanes) * sublanes
    padded_E = -(-E // _LANE) * _LANE
    # TODO(synk): if B << sublanes, folding seq rows into the sublane axis would
    # make the x tiles denser; not done here to keep the broadcast simple.

    vmem_cap = _vmem_capacity_bytes()
    # Generation-aware tile target: ~8 MiB x-tiles on 128 MiB chips (v5e/v6e),
    # ~4 MiB on 64 MiB-per-core v7x.
    target_block_bytes = (8 << 20) if vmem_cap >= (100 << 20) else (4 << 20)

    row_bytes = padded_B * padded_E * itemsize          # padded VMEM bytes / seq row
    ts = min(S, max(1, target_block_bytes // row_bytes))
    if vmem_cap < (100 << 20) and S >= 16:
        # v7x: keep >= 2 grid steps so "parallel" can shard across both TCs.
        half = -(-((S + 1) // 2) // sublanes) * sublanes
        ts = min(ts, half)
    if ts < S:
        # enc tile is (ts, E): its sublane dim must be a multiple of the packing.
        ts = max(sublanes, (ts // sublanes) * sublanes)
        ts = min(ts, S)
    grid = (pl.cdiv(S, ts),)

    # Accurate VMEM budget from padded tile footprints (+ scratch headroom).
    x_tile_bytes = ts * padded_B * padded_E * itemsize
    enc_tile_bytes = (-(-ts // sublanes) * sublanes) * padded_E * itemsize
    needed = 4 * x_tile_bytes + 2 * enc_tile_bytes      # dbl-buffered in + out + enc
    vmem_limit = int(min(needed + (8 << 20), 0.85 * vmem_cap))
    vmem_limit = max(vmem_limit, needed + (1 << 20))

    apply_dropout = bool(training) and float(dropout) > 0.0
    kernel = functools.partial(
        _pos_enc_kernel,
        keep_prob=1.0 - float(dropout),
        apply_dropout=apply_dropout,
    )

    in_specs = [
        pl.BlockSpec((ts, B, E), lambda i: (i, 0, 0)),   # x tile
        pl.BlockSpec((ts, E), lambda i: (i, 0)),         # 2-D encoding tile
    ]
    args = [x, enc]
    if apply_dropout:
        in_specs = [pl.BlockSpec(memory_space=pltpu.SMEM)] + in_specs
        args = [jnp.asarray([seed], dtype=jnp.int32)] + args

    return pl.pallas_call(
        kernel,
        out_shape=jax.ShapeDtypeStruct((S, B, E), x.dtype),
        grid=grid,
        in_specs=in_specs,
        out_specs=pl.BlockSpec((ts, B, E), lambda i: (i, 0, 0)),
        compiler_params=pltpu.CompilerParams(
            dimension_semantics=("parallel",),
            vmem_limit_bytes=vmem_limit,
        ),
        cost_estimate=pl.CostEstimate(
            flops=S * B * E,
            transcendentals=0,
            bytes_accessed=2 * S * B * E * itemsize + S * E * itemsize,
        ),
    )(*args)


if __name__ == "__main__":
    # Small but lane/sublane-dense shapes: E multiple of 128, B = 8 (f32 sublanes).
    seq_len, batch, emb_dim = 8, 8, 128
    block_size = 16
    dropout_rate = 0.1

    key = jax.random.PRNGKey(0)
    x = jax.random.normal(key, (seq_len, batch, emb_dim), dtype=jnp.float32)
    encoding = make_sinusoidal_encoding(block_size, emb_dim, dtype=x.dtype)

    ref = np.asarray(x) + np.asarray(encoding[:seq_len])[:, None, :]

    # Eval mode: dropout is identity -> exact match with the reference.
    out = positional_encoding(x, encoding, dropout=dropout_rate, training=False)
    out = jax.block_until_ready(out)
    np.testing.assert_allclose(np.asarray(out), ref, rtol=1e-6, atol=1e-6)

    # Training mode: every element must be 0 (dropped) or (x + enc) / keep_prob.
    # TODO(synk): torch.nn.Dropout's exact RNG stream cannot be reproduced; only
    # the dropout semantics (Bernoulli keep mask + 1/keep_prob scaling) are checked.
    out_tr = positional_encoding(
        x, encoding, dropout=dropout_rate, training=True, seed=1234)
    out_tr = np.asarray(jax.block_until_ready(out_tr))
    scaled = ref / (1.0 - dropout_rate)
    ok = np.isclose(out_tr, 0.0, atol=1e-6) | np.isclose(
        out_tr, scaled, rtol=1e-5, atol=1e-5)
    assert ok.all(), "dropout output must be 0 or the scaled (x + enc) value"
    assert (out_tr == 0.0).any() and (out_tr != 0.0).any()
    keep_frac = float((out_tr != 0.0).mean())
    assert abs(keep_frac - (1.0 - dropout_rate)) < 0.05, keep_frac

    print("KERNEL_OK")
</pallas_src>

<mosaic_0001>
module attributes {stable_mosaic.version = 11 : i64} {
  func.func @_pos_enc_kernel(%arg0: i32, %arg1: memref<8x8x128xf32, #tpu.memory_space<vmem>>, %arg2: memref<8x128xf32, #tpu.memory_space<vmem>>, %arg3: memref<8x8x128xf32, #tpu.memory_space<vmem>>) attributes {dimension_semantics = [#tpu.dimension_semantics<parallel>], iteration_bounds = array<i64: 1>, scalar_prefetch = 0 : i64, scratch_operands = 0 : i64, tpu.core_type = #tpu.core_type<tc>, window_params = [{transform_indices = @transform_0, window_bounds = array<i64: 8, 8, 128>}, {transform_indices = @transform_1, window_bounds = array<i64: 8, 128>}, {transform_indices = @transform_2, window_bounds = array<i64: 8, 8, 128>}]} {
    %c0 = arith.constant 0 : index
    %c0_0 = arith.constant 0 : index
    %c0_1 = arith.constant 0 : index
    %0 = vector.load %arg1[%c0, %c0_0, %c0_1] : memref<8x8x128xf32, #tpu.memory_space<vmem>>, vector<8x8x128xf32>
    %c0_2 = arith.constant 0 : index
    %c0_3 = arith.constant 0 : index
    %1 = vector.load %arg2[%c0_2, %c0_3] : memref<8x128xf32, #tpu.memory_space<vmem>>, vector<8x128xf32>
    %2 = vector.shape_cast %1 : vector<8x128xf32> to vector<8x1x128xf32>
    %3 = vector.broadcast %2 : vector<8x1x128xf32> to vector<8x8x128xf32>
    %4 = arith.addf %0, %3 : vector<8x8x128xf32>
    %c0_4 = arith.constant 0 : index
    %c0_5 = arith.constant 0 : index
    %c0_6 = arith.constant 0 : index
    %5 = vector.load %arg3[%c0_4, %c0_5, %c0_6] : memref<8x8x128xf32, #tpu.memory_space<vmem>>, vector<8x8x128xf32>
    tpu.vector_store %arg3[%c0_4, %c0_5, %c0_6], %4 {strides = array<i32>} : memref<8x8x128xf32, #tpu.memory_space<vmem>>, vector<8x8x128xf32>,
    return
  }
  func.func @transform_0(%arg0: i32) -> (i32, i32, i32) {
    %c0_i32 = arith.constant 0 : i32
    %c0_i32_0 = arith.constant 0 : i32
    %c0_i32_1 = arith.constant 0 : i32
    return %arg0, %c0_i32, %c0_i32_0 : i32, i32, i32
  }
  func.func @transform_1(%arg0: i32) -> (i32, i32) {
    %c0_i32 = arith.constant 0 : i32
    %c0_i32_0 = arith.constant 0 : i32
    return %arg0, %c0_i32 : i32, i32
  }
  func.func @transform_2(%arg0: i32) -> (i32, i32, i32) {
    %c0_i32 = arith.constant 0 : i32
    %c0_i32_0 = arith.constant 0 : i32
    %c0_i32_1 = arith.constant 0 : i32
    return %arg0, %c0_i32, %c0_i32_0 : i32, i32, i32
  }
}

</mosaic_0001>

<bundles_post_ra>
// kernel: tpu_custom_call.1
= control target key start
LH: loop header
LB: loop body
LE: loop exit
PB: predicated region body
PF: predicated region fallthrough
CT: control target
= control target key end

     0   :  { %7 = vsyncpa [#allocation3], 0  ;;  %s313_s0 = inlined_call_operand.hbm [shape: f32[8,8,128], index: 0, kind: input, shape index: {}]   ;;  %s314_s1 = inlined_call_operand.hbm [shape: f32[8,128], index: 1, kind: input, shape index: {}]   ;;  %s315_s2 = inlined_call_operand.hbm [shape: f32[8,8,128], index: 2, kind: output, shape index: {}]  }
   0x1   :  { %8 = vsyncpa [#allocation6], 0 }
   0x2   :  { %9 = vsyncpa [#allocation4], 0  ;;  %s250_s9 = smov [#allocation2]   ;;  %s178_s13 = scalar_lea.hbm %s313_s0, 1024 }
   0x3   :  { %s15_s10 = sshll.u32 %s250_s9, 4  ;;  %p179_p0 = scmp.ne.s32.totalorder %s313_s0, %s178_s13  ;;  %s16_s10 = int_to_ptr.vmem [resolvable:$true] %s15_s10 }
   0x4   :  { %p182_p1 = scmp.lt.u32.totalorder %s178_s13, %s313_s0 }
   0x6   :  { %p184_p2 = pnand %p182_p1, %p179_p0 }
   0x8   :  { %187 = shalt.err (!%p184_p2)
}
   0x9   :  { %s188_s18 = scalar_lea.vmem %s16_s10, 1024  ;;  %p193_p4 = scmp.lt.s32.totalorder %s16_s10, %s16_s10 }
   0xa   :  { %p189_p3 = scmp.ne.s32.totalorder %s16_s10, %s188_s18  ;;  %p194_p5 = scmp.lt.s32.totalorder %s188_s18, %s188_s18 }
   0xc   :  { %p195_p6 = por %p194_p5, %p193_p4 }
   0xe   :  { %p196_p7 = pnand %p195_p6, %p189_p3 }
  0x10   :  { %199 = shalt.err (!%p196_p7)
}
  0x11   :  { %s251_s19 = smov 128   ;;  %s252_s20 = smov 8  }
  0x12   :  { %21 = dma.hbm_to_vmem [thread:$0]  %s313_s0, 1024, %s16_s10, [#allocation3], %s251_s19, %s251_s19, %s252_s20  }
  0x13   :  { %s253_s23 = smov [#allocation5]   ;;  %s200_s27 = scalar_lea.hbm %s314_s1, 128 }
  0x14   :  { %s28_s24 = sshll.u32 %s253_s23, 4  ;;  %p201_p8 = scmp.ne.s32.totalorder %s314_s1, %s200_s27  ;;  %s29_s24 = int_to_ptr.vmem [resolvable:$true] %s28_s24 }
  0x15   :  { %p204_p9 = scmp.lt.u32.totalorder %s200_s27, %s314_s1 }
  0x17   :  { %p206_p10 = pnand %p204_p9, %p201_p8 }
  0x19   :  { %209 = shalt.err (!%p206_p10)
}
  0x1a   :  { %s210_s4 = scalar_lea.vmem %s29_s24, 128  ;;  %p215_p12 = scmp.lt.s32.totalorder %s29_s24, %s29_s24 }
  0x1b   :  { %p211_p11 = scmp.ne.s32.totalorder %s29_s24, %s210_s4  ;;  %p216_p13 = scmp.lt.s32.totalorder %s210_s4, %s210_s4 }
  0x1d   :  { %p217_p0 = por %p216_p13, %p215_p12 }
  0x1f   :  { %p218_p1 = pnand %p217_p0, %p211_p11 }
  0x21   :  { %221 = shalt.err (!%p218_p1)
}
  0x22   :  { %31 = dma.hbm_to_vmem [thread:$0]  %s314_s1, 128, %s29_s24, [#allocation6]  }
  0x23   :  { %244 = dma.done.wait [#allocation3], 1024  }
  0x24   :  { %245 = vsyncadd [#allocation3], 4294966272 }
  0x25   :  { %246 = dma.done.wait [#allocation6], 128  }
  0x26   :  { %247 = vsyncadd [#allocation6], 4294967168  ;;  %v52_v0 = vlaneseq  ;;  %v254_v1 = vmov 1966171168   ;;  %v46_v6 = vld [vmem:[#allocation5] sm:$0xff]  ;;  %v39_v18 = vld [vmem:[#allocation2 + $0x8] sm:$0xff] }
  0x27   :  { %v50_v2 = vunpack.c.l.s4 %v254_v1  ;;  %v48_v9 = vcombine.high %v46_v6, %v46_v6  ;;  %v38_v13 = vld [vmem:[#allocation2] sm:$0xff]  ;;  %v40_v19 = vld [vmem:[#allocation2 + $0x10] sm:$0xff]  ;;  %v41_v26 = vld [vmem:[#allocation2 + $0x18] sm:$0xff]  ;;  %s255_s1 = smov [#allocation7]  }
  0x28   :  { %v53_v3 = vshrl.u32 %v52_v0, 7  ;;  %v42_v25 = vld [vmem:[#allocation2 + $0x20] sm:$0xff]  ;;  %v43_v33 = vld [vmem:[#allocation2 + $0x28] sm:$0xff]  ;;  %v44_v34 = vld [vmem:[#allocation2 + $0x30] sm:$0xff]  ;;  %s158_s6 = sshll.u32 %s255_s1, 4  ;;  %s159_s6 = int_to_ptr.vmem [resolvable:$true] %s158_s6 }
  0x29   :  { %v51_v4 = vunpack.c.0.s8 %v50_v2  ;;  %v45_v40 = vld [vmem:[#allocation2 + $0x38] sm:$0xff]  ;;  %s222_s7 = scalar_lea.vmem %s159_s6, 1024  ;;  %p227_p3 = scmp.lt.s32.totalorder %s159_s6, %s159_s6 }
  0x2a   :  { %v99_v8 = vsub.s32 0, %v53_v3  ;;  %p223_p2 = scmp.ne.s32.totalorder %s159_s6, %s222_s7  ;;  %p228_p4 = scmp.lt.s32.totalorder %s222_s7, %s222_s7 }
  0x2b   :  { %v54_v5 = vsub.s32 %v51_v4, %v53_v3 }
  0x2c   :  { %p229_p5 = por %p228_p4, %p227_p3 }
  0x2d   :  { %v55_v7 = vrot.slane %v46_v6, %v54_v5  ;;  %v62_v12 = vrot.slane %v48_v9, %v54_v5 }
  0x2e   :  { %p230_p6 = pnand %p229_p5, %p223_p2 }
  0x2f   :  { %v71_v10 = vrot.slane %v55_v7, %v54_v5  ;;  %v63_v11 = vcombine.high %v55_v7, %v55_v7  ;;  %v78_v17 = vrot.slane %v62_v12, %v54_v5  ;;  %v64_v20 = vcombine.high %v62_v12, %v62_v12 }
  0x31   :  { %v100_v14 = vrot.slane %v71_v10, %v99_v8  ;;  %v85_v15 = vrot.slane %v63_v11, %v54_v5  ;;  %v93_v16 = vcombine.high %v71_v10, %v71_v10  ;;  %v116_v27 = vrot.slane %v78_v17, %v99_v8 }
  0x32   :  { %v92_v28 = vrot.slane %v64_v20, %v54_v5  ;;  %v94_v29 = vcombine.high %v78_v17, %v78_v17 }
  0x33   :  { %v137_v21 = vadd.f32 %v100_v14, %v38_v13  ;;  %v104_v22 = vrot.slane %v85_v15, %v99_v8  ;;  %v108_v23 = vrot.slane %v93_v16, %v99_v8  ;;  %v95_v24 = vcombine.high %v85_v15, %v85_v15 }
  0x34   :  { %v141_v35 = vadd.f32 %v116_v27, %v42_v25  ;;  %v120_v36 = vrot.slane %v92_v28, %v99_v8  ;;  %v124_v37 = vrot.slane %v94_v29, %v99_v8  ;;  %v96_v38 = vcombine.high %v92_v28, %v92_v28 }
  0x35   :  { %145 = vst [vmem:[#allocation7] sm:$0xff] %v137_v21  ;;  %v138_v30 = vadd.f32 %v104_v22, %v39_v18  ;;  %v139_v31 = vadd.f32 %v108_v23, %v40_v19  ;;  %v112_v32 = vrot.slane %v95_v24, %v99_v8 }
  0x36   :  { %149 = vst [vmem:[#allocation7 + $0x20] sm:$0xff] %v141_v35  ;;  %v142_v41 = vadd.f32 %v120_v36, %v43_v33  ;;  %v143_v42 = vadd.f32 %v124_v37, %v44_v34  ;;  %v128_v43 = vrot.slane %v96_v38, %v99_v8 }
  0x37   :  { %146 = vst [vmem:[#allocation7 + $0x8] sm:$0xff] %v138_v30  ;;  %147 = vst [vmem:[#allocation7 + $0x10] sm:$0xff] %v139_v31  ;;  %v140_v39 = vadd.f32 %v112_v32, %v41_v26 }
  0x38   :  { %150 = vst [vmem:[#allocation7 + $0x28] sm:$0xff] %v142_v41  ;;  %151 = vst [vmem:[#allocation7 + $0x30] sm:$0xff] %v143_v42  ;;  %v144_v44 = vadd.f32 %v128_v43, %v45_v40 }
  0x39   :  { %148 = vst [vmem:[#allocation7 + $0x18] sm:$0xff] %v140_v39 }
  0x3a   :  { %152 = vst [vmem:[#allocation7 + $0x38] sm:$0xff] %v144_v44 }
  0x3b   :  { %233 = shalt.err (!%p230_p6)
}
  0x3c   :  { %s234_s10 = scalar_lea.hbm %s315_s2, 1024 }
  0x3d   :  { %p235_p7 = scmp.ne.s32.totalorder %s315_s2, %s234_s10  ;;  %p238_p8 = scmp.lt.u32.totalorder %s234_s10, %s315_s2 }
  0x3f   :  { %p240_p9 = pnand %p238_p8, %p235_p7 }
  0x41   :  { %243 = shalt.err (!%p240_p9)
}
  0x42   :  { %164 = dma.vmem_to_hbm [thread:$0]  %s159_s6, 1024, %s315_s2, [#allocation4], %s251_s19, %s251_s19, %s252_s20  }
  0x43   :  { %248 = dma.done.wait [#allocation4], 1024  }
  0x44   :  { %249 = vsyncadd [#allocation4], 4294966272 }
  0x45   :  { %168 = vsyncpa [#allocation3], 1 }
  0x46   :  { %169 = vsyncpa [#allocation6], 1 }
  0x47   :  { %170 = vsyncpa [#allocation4], 1 }

</bundles_post_ra>
